<compile_context>
chip_gen: v6e
topology: v6e:2x2x1
jax: 0.10.0
libtpu: 0.0.40
codegen_flags: <defaults>
</compile_context>

<pallas_src>
import functools

import jax
import jax.numpy as jnp
import numpy as np
from jax.experimental import pallas as pl
from jax.experimental.pallas import tpu as pltpu


def _bn_relu_conv_kernel(x_ref, scale_ref, shift_ref, w_ref, mask_ref, o_ref, *,
                         tap_offsets, out_len, use_mask, compute_dtype):
    # x_ref:     (Cin, L)           lane-flat activations of B zero-padded images
    #                               (L = B*Hp*Wp + tail; tail keeps tap slices in range)
    # scale_ref: (Cin, 1)           folded BN scale = gamma / sqrt(var + eps)
    # shift_ref: (Cin, 1)           folded BN shift = beta - mean * scale
    # w_ref:     (Cout, KH*KW*Cin)  im2col-ordered weight (tap-major, channel-minor)
    # mask_ref:  (1, L)             {0,1} halo mask (0 on padded border / tail)
    # o_ref:     (Cout, B*Hp*Wp)    lane-dense extended (stride-1) conv output

    # Fused inference BatchNorm + ReLU on the lane-dense flat view (f32, VPU).
    y = jnp.maximum(x_ref[...] * scale_ref[...] + shift_ref[...], 0.0)
    if use_mask:
        # Halo/tail must be exactly zero before the conv (BN shift makes the wrapper's
        # zero padding nonzero after the affine).  One VPU multiply, no halo stores.
        y = y * mask_ref[...]
    y = y.astype(compute_dtype)

    if len(tap_offsets) == 1:
        # 1x1 fast path: BN+ReLU + one matmul, zero im2col staging.
        off = tap_offsets[0]
        rhs = y[:, off:off + out_len]
    else:
        # im2col RHS: each tap is a contiguous lane slice of the flat activation,
        # stacked along the contraction (sublane) dim.  No narrow-lane relayouts.
        rhs = jnp.concatenate([y[:, off:off + out_len] for off in tap_offsets],
                              axis=0)

    # Single MXU matmul per grid step; f32 accumulation; lane-dense store.
    o_ref[...] = jnp.dot(w_ref[...], rhs,
                         preferred_element_type=jnp.float32).astype(o_ref.dtype)


def conv_module_forward(x_nchw, params, *, stride=1, padding=0,
                        compute_dtype=jnp.bfloat16, max_batch_block=8,
                        vmem_budget_bytes=36 * 2**20):
    """Forward of Conv(in_ch, out_ch, k, stride, padding) with arch=0 (groups=1).

    x_nchw: (N, Cin, H, W) float32
    params: gamma/beta/running_mean/running_var (Cin,), weight (Cout, Cin, KH, KW)
    compute_dtype: MXU operand dtype (bf16 default = native MXU path; accumulation f32)
    returns (N, Cout, HO, WO) float32  (BatchNorm uses eval / running-stats semantics)
    """
    eps = 1e-5
    gamma, beta = params["gamma"], params["beta"]
    mean, var = params["running_mean"], params["running_var"]
    w_oihw = params["weight"]

    N, Cin, H, W = x_nchw.shape
    Cout, _, KH, KW = w_oihw.shape
    Hp, Wp = H + 2 * padding, W + 2 * padding
    HO = (Hp - KH) // stride + 1
    WO = (Wp - KW) // stride + 1
    K = KH * KW * Cin
    img = Hp * Wp
    # Last taps read slightly past the last image into a zero tail (garbage columns only).
    tail = max(0, (KH - 1) * Wp + (KW - 1))
    cd_bytes = np.dtype(compute_dtype).itemsize

    # Fold BN (inference) into per-channel scale/shift.
    scale = (gamma / jnp.sqrt(var + eps)).astype(jnp.float32)
    shift = (beta - mean * scale).astype(jnp.float32)

    # ---- pick the per-step batch block B against a VMEM budget (v7x: 64 MiB) ----
    def vmem_bytes(b):
        L, lout = b * img + tail, b * img
        return (2 * Cin * L * 4               # x block (double-buffered)
                + 2 * L * 4                   # halo mask
                + 2 * Cout * K * cd_bytes     # weight
                + 2 * Cout * lout * 4         # output block (double-buffered)
                + Cin * L * (4 + cd_bytes)    # BN+ReLU temporaries
                + K * lout * cd_bytes         # im2col RHS
                + Cout * lout * 4             # matmul result
                + 4 * Cin * 4)                # scale/shift

    B = 1
    for b in range(1, min(max_batch_block, N) + 1):
        if N % b == 0 and vmem_bytes(b) <= vmem_budget_bytes:
            B = b
    G = N // B                      # keep G >= 2 (lower max_batch_block) to feed both v7x TCs
    L = B * img + tail
    Lout = B * img

    # Weight reshaped once for the im2col matmul (tap-major, channel-minor):
    #   w2[o, (i*KW + j)*Cin + c] = weight[o, c, i, j]
    w2 = jnp.transpose(w_oihw, (0, 2, 3, 1)).reshape(Cout, K).astype(compute_dtype)

    # Lane-flat zero-padded activation layout: (G, Cin, B*Hp*Wp + tail).
    x = x_nchw.astype(jnp.float32)
    xp = jnp.pad(x, ((0, 0), (0, 0), (padding, padding), (padding, padding)))
    xp = xp.reshape(G, B, Cin, img).transpose(0, 2, 1, 3).reshape(G, Cin, B * img)
    xp = jnp.pad(xp, ((0, 0), (0, 0), (0, tail)))

    # {0,1} halo mask (host-side constant, identical for every grid step).
    m = np.zeros((B, Hp, Wp), np.float32)
    m[:, padding:padding + H, padding:padding + W] = 1.0
    mask = np.concatenate([m.reshape(-1), np.zeros((tail,), np.float32)])
    mask = jnp.asarray(mask.reshape(1, L))
    use_mask = bool(padding > 0 or tail > 0)

    tap_offsets = tuple(i * Wp + j for i in range(KH) for j in range(KW))

    kernel = functools.partial(
        _bn_relu_conv_kernel, tap_offsets=tap_offsets, out_len=Lout,
        use_mask=use_mask, compute_dtype=compute_dtype)

    cost = pl.CostEstimate(
        flops=2 * N * img * K * Cout + 4 * N * Cin * img,
        transcendentals=0,
        bytes_accessed=4 * (N * Cin * img + N * Cout * img + L + 2 * Cin)
                       + Cout * K * cd_bytes)

    vmem_limit = int(min(112 * 2**20, max(32 * 2**20, 2 * vmem_bytes(B))))

    out = pl.pallas_call(
        kernel,
        out_shape=jax.ShapeDtypeStruct((G, Cout, Lout), jnp.float32),
        grid_spec=pltpu.PrefetchScalarGridSpec(
            num_scalar_prefetch=0,
            grid=(G,),
            in_specs=[
                pl.BlockSpec((pl.Squeezed(), Cin, L), lambda g: (g, 0, 0)),
                pl.BlockSpec((Cin, 1), lambda g: (0, 0)),
                pl.BlockSpec((Cin, 1), lambda g: (0, 0)),
                pl.BlockSpec((Cout, K), lambda g: (0, 0)),
                pl.BlockSpec((1, L), lambda g: (0, 0)),
            ],
            out_specs=pl.BlockSpec((pl.Squeezed(), Cout, Lout),
                                   lambda g: (g, 0, 0)),
        ),
        compiler_params=pltpu.CompilerParams(
            dimension_semantics=("parallel",),
            vmem_limit_bytes=vmem_limit),
        cost_estimate=cost,
    )(xp, scale.reshape(Cin, 1), shift.reshape(Cin, 1), w2, mask)

    # Extended (stride-1 over the padded grid) output -> NCHW strided extraction.
    # For stride > 1 the kernel computes the full stride-1 grid and we subsample here
    # (wasteful for s>1, but this DenseNet only uses stride=1 convs).
    out = out.reshape(G, Cout, B, Hp, Wp).transpose(0, 2, 1, 3, 4)
    out = out.reshape(N, Cout, Hp, Wp)
    out = out[:, :,
              0:stride * (HO - 1) + 1:stride,
              0:stride * (WO - 1) + 1:stride]
    return out


def _reference_forward(x_nchw, params, *, stride, padding):
    """Pure-JAX reference (BN-eval + ReLU + conv) for correctness checks."""
    eps = 1e-5
    scale = params["gamma"] / jnp.sqrt(params["running_var"] + eps)
    shift = params["beta"] - params["running_mean"] * scale
    y = x_nchw * scale[None, :, None, None] + shift[None, :, None, None]
    y = jnp.maximum(y, 0.0)
    return jax.lax.conv_general_dilated(
        y, params["weight"],
        window_strides=(stride, stride),
        padding=[(padding, padding), (padding, padding)],
        dimension_numbers=("NCHW", "OIHW", "NCHW"),
    )


def _make_params(key, cin, cout, k):
    kg, kb, km, kv, kw = jax.random.split(key, 5)
    return {
        "gamma": jax.random.normal(kg, (cin,), dtype=jnp.float32) * 0.1 + 1.0,
        "beta": jax.random.normal(kb, (cin,), dtype=jnp.float32) * 0.1,
        "running_mean": jax.random.normal(km, (cin,), dtype=jnp.float32) * 0.1,
        "running_var": jnp.abs(jax.random.normal(kv, (cin,), dtype=jnp.float32)) * 0.1 + 1.0,
        "weight": jax.random.normal(kw, (cout, cin, k, k), dtype=jnp.float32)
                  * (1.0 / np.sqrt(cin * k * k)),
    }


if __name__ == "__main__":
    key = jax.random.PRNGKey(0)
    kx, kp1, kp2 = jax.random.split(key, 3)

    # Shapes consistent with the module on CIFAR: Conv(in=4, out=8, k, s, p).
    N, Cin, H, W = 2, 4, 16, 16
    Cout = 8
    x = jax.random.normal(kx, (N, Cin, H, W), dtype=jnp.float32)

    # --- 3x3, stride 1, pad 1, f32 MXU operands (strict check) ---
    p3 = _make_params(kp1, Cin, Cout, 3)
    out3 = jax.block_until_ready(
        conv_module_forward(x, p3, stride=1, padding=1, compute_dtype=jnp.float32))
    ref3 = jax.block_until_ready(_reference_forward(x, p3, stride=1, padding=1))
    np.testing.assert_allclose(np.asarray(out3), np.asarray(ref3),
                               rtol=2e-5, atol=2e-5)

    # --- 1x1, stride 1, pad 0 (bottleneck/transition conv fast path), f32 ---
    p1 = _make_params(kp2, Cin, Cout, 1)
    out1 = jax.block_until_ready(
        conv_module_forward(x, p1, stride=1, padding=0, compute_dtype=jnp.float32))
    ref1 = jax.block_until_ready(_reference_forward(x, p1, stride=1, padding=0))
    np.testing.assert_allclose(np.asarray(out1), np.asarray(ref1),
                               rtol=2e-5, atol=2e-5)

    # --- 3x3, stride 2, pad 1 (exercise the strided extraction), f32 ---
    out3s = jax.block_until_ready(
        conv_module_forward(x, p3, stride=2, padding=1, compute_dtype=jnp.float32))
    ref3s = jax.block_until_ready(_reference_forward(x, p3, stride=2, padding=1))
    np.testing.assert_allclose(np.asarray(out3s), np.asarray(ref3s),
                               rtol=2e-5, atol=2e-5)

    # --- 3x3 with default bf16 MXU operands (fast path on all chips), loose tol ---
    out3b = jax.block_until_ready(conv_module_forward(x, p3, stride=1, padding=1))
    np.testing.assert_allclose(np.asarray(out3b), np.asarray(ref3),
                               rtol=5e-2, atol=5e-2)

    print("KERNEL_OK")
</pallas_src>

<mosaic_0001>
module attributes {stable_mosaic.version = 11 : i64} {
  func.func @_bn_relu_conv_kernel(%arg0: i32, %arg1: memref<1x4x686xf32, #tpu.memory_space<vmem>>, %arg2: memref<4x1xf32, #tpu.memory_space<vmem>>, %arg3: memref<4x1xf32, #tpu.memory_space<vmem>>, %arg4: memref<8x36xf32, #tpu.memory_space<vmem>>, %arg5: memref<1x686xf32, #tpu.memory_space<vmem>>, %arg6: memref<1x8x648xf32, #tpu.memory_space<vmem>>) attributes {dimension_semantics = [#tpu.dimension_semantics<parallel>], iteration_bounds = array<i64: 1>, scalar_prefetch = 0 : i64, scratch_operands = 0 : i64, tpu.core_type = #tpu.core_type<tc>, window_params = [{transform_indices = @transform_0, window_bounds = array<i64: 1, 4, 686>}, {pipeline_mode = #tpu.pipeline_mode<synchronous>, transform_indices = @transform_1, window_bounds = array<i64: 4, 1>}, {pipeline_mode = #tpu.pipeline_mode<synchronous>, transform_indices = @transform_2, window_bounds = array<i64: 4, 1>}, {pipeline_mode = #tpu.pipeline_mode<synchronous>, transform_indices = @transform_3, window_bounds = array<i64: 8, 36>}, {pipeline_mode = #tpu.pipeline_mode<synchronous>, transform_indices = @transform_4, window_bounds = array<i64: 1, 686>}, {transform_indices = @transform_5, window_bounds = array<i64: 1, 8, 648>}]} {
    %c0 = arith.constant 0 : index
    %c0_0 = arith.constant 0 : index
    %c0_1 = arith.constant 0 : index
    %0 = vector.load %arg1[%c0, %c0_0, %c0_1] : memref<1x4x686xf32, #tpu.memory_space<vmem>>, vector<1x4x686xf32>
    %1 = vector.shape_cast %0 : vector<1x4x686xf32> to vector<4x686xf32>
    %c0_2 = arith.constant 0 : index
    %c0_3 = arith.constant 0 : index
    %2 = vector.load %arg2[%c0_2, %c0_3] : memref<4x1xf32, #tpu.memory_space<vmem>>, vector<4x1xf32>
    %3 = vector.broadcast %2 : vector<4x1xf32> to vector<4x686xf32>
    %4 = arith.mulf %1, %3 : vector<4x686xf32>
    %c0_4 = arith.constant 0 : index
    %c0_5 = arith.constant 0 : index
    %5 = vector.load %arg3[%c0_4, %c0_5] : memref<4x1xf32, #tpu.memory_space<vmem>>, vector<4x1xf32>
    %6 = vector.broadcast %5 : vector<4x1xf32> to vector<4x686xf32>
    %7 = arith.addf %4, %6 : vector<4x686xf32>
    %cst = arith.constant 0.000000e+00 : f32
    %8 = vector.broadcast %cst : f32 to vector<4x686xf32>
    %9 = arith.maximumf %7, %8 : vector<4x686xf32>
    %c0_6 = arith.constant 0 : index
    %c0_7 = arith.constant 0 : index
    %10 = vector.load %arg5[%c0_6, %c0_7] : memref<1x686xf32, #tpu.memory_space<vmem>>, vector<1x686xf32>
    %11 = vector.broadcast %10 : vector<1x686xf32> to vector<4x686xf32>
    %12 = arith.mulf %9, %11 : vector<4x686xf32>
    %13 = vector.extract_strided_slice %12 {offsets = [0, 0], sizes = [4, 648], strides = [1, 1]} : vector<4x686xf32> to vector<4x648xf32>
    %14 = vector.extract_strided_slice %12 {offsets = [0, 1], sizes = [4, 648], strides = [1, 1]} : vector<4x686xf32> to vector<4x648xf32>
    %15 = vector.extract_strided_slice %12 {offsets = [0, 2], sizes = [4, 648], strides = [1, 1]} : vector<4x686xf32> to vector<4x648xf32>
    %16 = vector.extract_strided_slice %12 {offsets = [0, 18], sizes = [4, 648], strides = [1, 1]} : vector<4x686xf32> to vector<4x648xf32>
    %17 = vector.extract_strided_slice %12 {offsets = [0, 19], sizes = [4, 648], strides = [1, 1]} : vector<4x686xf32> to vector<4x648xf32>
    %18 = vector.extract_strided_slice %12 {offsets = [0, 20], sizes = [4, 648], strides = [1, 1]} : vector<4x686xf32> to vector<4x648xf32>
    %19 = vector.extract_strided_slice %12 {offsets = [0, 36], sizes = [4, 648], strides = [1, 1]} : vector<4x686xf32> to vector<4x648xf32>
    %20 = vector.extract_strided_slice %12 {offsets = [0, 37], sizes = [4, 648], strides = [1, 1]} : vector<4x686xf32> to vector<4x648xf32>
    %21 = vector.extract_strided_slice %12 {offsets = [0, 38], sizes = [4, 648], strides = [1, 1]} : vector<4x686xf32> to vector<4x648xf32>
    %22 = tpu.concatenate %13, %14, %15, %16, %17, %18, %19, %20, %21 in 0 : vector<4x648xf32>, vector<4x648xf32>, vector<4x648xf32>, vector<4x648xf32>, vector<4x648xf32>, vector<4x648xf32>, vector<4x648xf32>, vector<4x648xf32>, vector<4x648xf32> -> vector<36x648xf32>
    %c0_8 = arith.constant 0 : index
    %c0_9 = arith.constant 0 : index
    %23 = vector.load %arg4[%c0_8, %c0_9] : memref<8x36xf32, #tpu.memory_space<vmem>>, vector<8x36xf32>
    %cst_10 = arith.constant dense<0.000000e+00> : vector<8x648xf32>
    %24 = tpu.matmul %23, %22, %cst_10 {dimension_numbers = #tpu.dot_dimension_numbers<[1], [0], [0], [1], [0, 0, 1, 1], [], []>} : vector<8x36xf32>, vector<36x648xf32>, vector<8x648xf32> -> vector<8x648xf32>
    %c0_11 = arith.constant 0 : index
    %c0_12 = arith.constant 0 : index
    %c0_13 = arith.constant 0 : index
    %25 = vector.load %arg6[%c0_11, %c0_12, %c0_13] : memref<1x8x648xf32, #tpu.memory_space<vmem>>, vector<1x8x648xf32>
    %26 = vector.shape_cast %25 : vector<1x8x648xf32> to vector<8x648xf32>
    %27 = vector.shape_cast %24 : vector<8x648xf32> to vector<1x8x648xf32>
    tpu.vector_store %arg6[%c0_11, %c0_12, %c0_13], %27 {strides = array<i32>} : memref<1x8x648xf32, #tpu.memory_space<vmem>>, vector<1x8x648xf32>,
    return
  }
  func.func @transform_0(%arg0: i32) -> (i32, i32, i32) {
    %c0_i32 = arith.constant 0 : i32
    %c0_i32_0 = arith.constant 0 : i32
    %c0_i32_1 = arith.constant 0 : i32
    return %arg0, %c0_i32, %c0_i32_0 : i32, i32, i32
  }
  func.func @transform_1(%arg0: i32) -> (i32, i32) {
    %c0_i32 = arith.constant 0 : i32
    %c0_i32_0 = arith.constant 0 : i32
    %c0_i32_1 = arith.constant 0 : i32
    return %c0_i32, %c0_i32_0 : i32, i32
  }
  func.func @transform_2(%arg0: i32) -> (i32, i32) {
    %c0_i32 = arith.constant 0 : i32
    %c0_i32_0 = arith.constant 0 : i32
    %c0_i32_1 = arith.constant 0 : i32
    return %c0_i32, %c0_i32_0 : i32, i32
  }
  func.func @transform_3(%arg0: i32) -> (i32, i32) {
    %c0_i32 = arith.constant 0 : i32
    %c0_i32_0 = arith.constant 0 : i32
    %c0_i32_1 = arith.constant 0 : i32
    return %c0_i32, %c0_i32_0 : i32, i32
  }
  func.func @transform_4(%arg0: i32) -> (i32, i32) {
    %c0_i32 = arith.constant 0 : i32
    %c0_i32_0 = arith.constant 0 : i32
    %c0_i32_1 = arith.constant 0 : i32
    return %c0_i32, %c0_i32_0 : i32, i32
  }
  func.func @transform_5(%arg0: i32) -> (i32, i32, i32) {
    %c0_i32 = arith.constant 0 : i32
    %c0_i32_0 = arith.constant 0 : i32
    %c0_i32_1 = arith.constant 0 : i32
    return %arg0, %c0_i32, %c0_i32_0 : i32, i32, i32
  }
}

</mosaic_0001>

<bundles_post_ra>
// kernel: tpu_custom_call.1
= control target key start
LH: loop header
LB: loop body
LE: loop exit
PB: predicated region body
PF: predicated region fallthrough
CT: control target
= control target key end

     0   :  { %10 = vsyncpa [#allocation3], 0  ;;  %s976_s0 = inlined_call_operand.hbm [shape: f32[1,4,686], index: 0, kind: input, shape index: {}]   ;;  %s977_s1 = inlined_call_operand.vmem [shape: f32[4,1], index: 1, kind: input, shape index: {}]   ;;  %s978_s2 = inlined_call_operand.vmem [shape: f32[4,1], index: 2, kind: input, shape index: {}]   ;;  %s979_s3 = inlined_call_operand.vmem [shape: f32[8,36], index: 3, kind: input, shape index: {}]   ;;  %s980_s4 = inlined_call_operand.vmem [shape: f32[1,686], index: 4, kind: input, shape index: {}]   ;;  %s981_s5 = inlined_call_operand.hbm [shape: f32[1,8,648], index: 5, kind: output, shape index: {}]  }
   0x1   :  { %11 = vsyncpa [#allocation4], 0  ;;  %s648_s18 = smov [#allocation2]  }
   0x2   :  { %s18_s19 = sshll.u32 %s648_s18, 4  ;;  %s19_s19 = int_to_ptr.vmem [resolvable:$true] %s18_s19 }
   0x3   :  { %s612_s20 = scalar_lea.vmem %s19_s19, 384  ;;  %p617_p1 = scmp.lt.s32.totalorder %s19_s19, %s19_s19 }
   0x4   :  { %p613_p0 = scmp.ne.s32.totalorder %s19_s19, %s612_s20  ;;  %p618_p2 = scmp.lt.s32.totalorder %s612_s20, %s612_s20 }
   0x6   :  { %p619_p3 = por %p618_p2, %p617_p1 }
   0x8   :  { %p620_p4 = pnand %p619_p3, %p613_p0 }
   0xa   :  { %623 = shalt.err (!%p620_p4)
}
   0xb   :  { %21 = dma.hbm_to_vmem [thread:$0]  %s976_s0, 384, %s19_s19, [#allocation3]  }
   0xc   :  { %644 = dma.done.wait [#allocation3], 384  }
   0xd   :  { %645 = vsyncadd [#allocation3], 4294966912  ;;  %v649_v0 = vmov 0   ;;  %v36_v1 = vld [vmem:[%s977_s1] sm:$0xf]  ;;  %v44_v5 = vlaneseq  ;;  %v34_v17 = vld [vmem:[#allocation2 + $0x8] sm:$0xff] }
   0xe   :  { %603 = vset.pattern.permute.xlu0 %v649_v0  ;;  %v52_v2 = vld [vmem:[%s978_s2] sm:$0xf]  ;;  %v650_v3 = vmov 839922192   ;;  %s651_s1 = smov 90   ;;  %s652_s2 = smov 91  }
   0xf   :  { %39 = vperm.xlu0 %603, %v36_v1   ;;  %v42_v4 = vunpack.c.l.s4 %v650_v3  ;;  %v45_v7 = vshrl.u32 %v44_v5, 7  ;;  %v71_v14 = vld [vmem:[%s980_s4] sm:$0x3f]  ;;  %s653_s4 = smov 92   ;;  %v35_v34 = vld [vmem:[#allocation2 + $0x10] sm:$0xff]  ;;  %s654_s28 = smov 109  }
  0x10   :  { %v33_v16 = vld [vmem:[#allocation2] sm:$0xff]  ;;  %s655_s29 = smov 108   ;;  %s656_s30 = smov 126   ;;  %v659_v47 = vmov 0.0   ;;  %vm298_vm0 = vcmask 736256   ;;  %vm274_vm1 = vcmask 744448  }
  0x11   :  { %v43_v6 = vunpack.c.0.s8 %v42_v4  ;;  %v75_v9 = vsub.s32 0, %v45_v7  ;;  %v79_v10 = vsub.s32 1, %v45_v7  ;;  %v83_v11 = vsub.s32 2, %v45_v7  ;;  %s657_s6 = smov 110   ;;  %s658_s7 = smov 127   ;;  %410 = vmatprep.mubr.f32.mxu0 %v659_v47  ;;  %481 = vmatprep.mubr.f32.mxu1 %v659_v47 }
  0x12   :  { %v87_v12 = vsub.s32 3, %v45_v7  ;;  %v91_v35 = vsub.s32 4, %v45_v7  ;;  %v95_v36 = vsub.s32 5, %v45_v7  ;;  %vm304_vm2 = vcmask 1043456  }
  0x13   :  { %55 = vperm.xlu0 %603, %v52_v2   ;;  %v46_v8 = vsub.s32 %v43_v6, %v45_v7  ;;  %v76_v18 = vrot.slane %v71_v14, %v75_v9  ;;  %v80_v19 = vrot.slane %v71_v14, %v79_v10  ;;  %v84_v20 = vrot.slane %v71_v14, %v83_v11 }
  0x14   :  { %v88_v21 = vrot.slane %v71_v14, %v87_v12  ;;  %v92_v38 = vrot.slane %v71_v14, %v91_v35  ;;  %v96_v39 = vrot.slane %v71_v14, %v95_v36  ;;  %vm250_vm3 = vcmask 752640  }
  0x15   :  { %v97_v26 = vcombine.low %v76_v18, %v80_v19  ;;  %vm226_vm4 = vcmask 883712   ;;  %vm202_vm5 = vcmask 891904   ;;  %vm178_vm6 = vcmask 900096  }
  0x16   :  { %v98_v27 = vcombine.low %v84_v20, %v88_v21  ;;  %v99_v41 = vcombine.low %v92_v38, %v96_v39  ;;  %vm130_vm7 = vcmask 1039360   ;;  %vm154_vm8 = vcmask 1031168  }
  0x17   :  { %vm330_vm9 = vcmask 293888   ;;  %vm564_vm10 = vcmask 64512  }
  0x8a   :  { %v40_v13 = vpop.permute.xlu0 %39 }
  0x8b   :  { %v47_v15 = vrot.slane %v40_v13, %v46_v8 }
  0x8d   :  { %v49_v23 = vmul.f32 %v47_v15, %v33_v16  ;;  %v50_v24 = vmul.f32 %v47_v15, %v34_v17  ;;  %v51_v37 = vmul.f32 %v47_v15, %v35_v34 }
  0x8e   :  { %v56_v22 = vpop.permute.xlu0 %55 }
  0x8f   :  { %v63_v25 = vrot.slane %v56_v22, %v46_v8 }
  0x91   :  { %v65_v28 = vadd.f32 %v63_v25, %v49_v23  ;;  %v66_v29 = vadd.f32 %v63_v25, %v50_v24  ;;  %v67_v40 = vadd.f32 %v63_v25, %v51_v37 }
  0x93   :  { %v68_v30 = vmax.f32 %v65_v28, 0.0  ;;  %v69_v31 = vmax.f32 %v66_v29, 0.0  ;;  %v70_v42 = vmax.f32 %v67_v40, 0.0 }
  0x95   :  { %v703_v32 = vmul.f32 %v97_v26, %v68_v30  ;;  %v705_v33 = vmul.f32 %v98_v27, %v69_v31  ;;  %v727_v43 = vmul.f32 %v99_v41, %v70_v42 }
  0x97   :  { %290 = vrot.lane.b32.xlu1 %v705_v33, %s651_s1  ;;  %264 = vrot.lane.b32.xlu0 %v703_v32, %s652_s2  ;;  %v751_v44 = vcombine.high %v703_v32, %v703_v32  ;;  %v115_v45 = vcombine.low %v703_v32, %v703_v32  ;;  %v116_v46 = vcombine.low %v705_v33, %v705_v33 }
  0x98   :  { %v782_v48 = vcombine.high %v705_v33, %v705_v33  ;;  %v117_v49 = vcombine.low %v727_v43, %v727_v43  ;;  %v794_v50 = vcombine.high %v727_v43, %v727_v43 }
  0x9b   :  { %242 = vrot.lane.b32.xlu1 %v705_v33, %s653_s4  ;;  %286 = vrot.lane.b32.xlu0 %v703_v32, %s651_s1 }
  0x9f   :  { %238 = vrot.lane.b32.xlu1 %v703_v32, %s653_s4  ;;  %194 = vrot.lane.b32.xlu0 %v705_v33, %s654_s28 }
  0xa3   :  { %216 = vrot.lane.b32.xlu1 %v703_v32, %s655_s29  ;;  %146 = vrot.lane.b32.xlu0 %v705_v33, %s656_s30 }
  0xa7   :  { %190 = vrot.lane.b32.xlu1 %v703_v32, %s654_s28  ;;  %268 = vrot.lane.b32.xlu0 %v705_v33, %s652_s2 }
  0xab   :  { %168 = vrot.lane.b32.xlu1 %v703_v32, %s657_s6  ;;  %272 = vrot.lane.b32.xlu0 %v727_v43, %s652_s2 }
  0xaf   :  { %142 = vrot.lane.b32.xlu1 %v703_v32, %s656_s30  ;;  %198 = vrot.lane.b32.xlu0 %v727_v43, %s654_s28 }
  0xb3   :  { %120 = vrot.lane.b32.xlu1 %v703_v32, %s658_s7  ;;  %224 = vrot.lane.b32.xlu0 %v727_v43, %s655_s29 }
  0xb7   :  { %294 = vrot.lane.b32.xlu1 %v727_v43, %s651_s1  ;;  %150 = vrot.lane.b32.xlu0 %v727_v43, %s656_s30 }
  0xbb   :  { %246 = vrot.lane.b32.xlu1 %v727_v43, %s653_s4  ;;  %176 = vrot.lane.b32.xlu0 %v727_v43, %s657_s6 }
  0xbf   :  { %220 = vrot.lane.b32.xlu1 %v705_v33, %s655_s29  ;;  %240 = vrot.lane.b32.xlu0 %v751_v44, %s653_s4 }
  0xc3   :  { %172 = vrot.lane.b32.xlu1 %v705_v33, %s657_s6  ;;  %262 = vrot.lane.b32.xlu0 %v115_v45, %s652_s2 }
  0xc7   :  { %124 = vrot.lane.b32.xlu1 %v705_v33, %s658_s7  ;;  %218 = vrot.lane.b32.xlu0 %v116_v46, %s655_s29 }
  0xcb   :  { %214 = vrot.lane.b32.xlu0 %v115_v45, %s655_s29  ;;  %288 = vrot.lane.b32.xlu1 %v751_v44, %s651_s1 }
  0xcf   :  { %170 = vrot.lane.b32.xlu0 %v116_v46, %s657_s6  ;;  %266 = vrot.lane.b32.xlu1 %v116_v46, %s652_s2 }
  0xd3   :  { %166 = vrot.lane.b32.xlu0 %v115_v45, %s657_s6  ;;  %192 = vrot.lane.b32.xlu1 %v751_v44, %s654_s28 }
  0xd7   :  { %122 = vrot.lane.b32.xlu0 %v116_v46, %s658_s7  ;;  %144 = vrot.lane.b32.xlu1 %v751_v44, %s656_s30 }
  0xdb   :  { %292 = vrot.lane.b32.xlu0 %v782_v48, %s651_s1  ;;  %118 = vrot.lane.b32.xlu1 %v115_v45, %s658_s7 }
  0xdf   :  { %244 = vrot.lane.b32.xlu0 %v782_v48, %s653_s4  ;;  %270 = vrot.lane.b32.xlu1 %v117_v49, %s652_s2 }
  0xe3   :  { %296 = vrot.lane.b32.xlu0 %v794_v50, %s651_s1  ;;  %248 = vrot.lane.b32.xlu1 %v794_v50, %s653_s4 }
  0xe7   :  { %222 = vrot.lane.b32.xlu0 %v117_v49, %s655_s29  ;;  %196 = vrot.lane.b32.xlu1 %v782_v48, %s654_s28 }
  0xeb   :  { %174 = vrot.lane.b32.xlu0 %v117_v49, %s657_s6  ;;  %200 = vrot.lane.b32.xlu1 %v794_v50, %s654_s28 }
  0xef   :  { %126 = vrot.lane.b32.xlu0 %v117_v49, %s658_s7  ;;  %148 = vrot.lane.b32.xlu1 %v782_v48, %s656_s30 }
  0xf3   :  { %152 = vrot.lane.b32.xlu1 %v794_v50, %s656_s30 }
  0xf7   :  { %128 = vrot.lane.b32.xlu1 %v727_v43, %s658_s7 }
 0x109   :  { %v813_v51 = vpop.permute.xlu1 %290  ;;  %v265_v52 = vpop.permute.xlu0 %264 }
 0x10d   :  { %v815_v53 = vpop.permute.xlu1 %242  ;;  %v287_v54 = vpop.permute.xlu0 %286 }
 0x111   :  { %v239_v55 = vpop.permute.xlu1 %238  ;;  %v817_v56 = vpop.permute.xlu0 %194 }
 0x115   :  { %v217_v57 = vpop.permute.xlu1 %216  ;;  %v819_v58 = vpop.permute.xlu0 %146 }
 0x119   :  { %v191_v59 = vpop.permute.xlu1 %190  ;;  %v821_v60 = vpop.permute.xlu0 %268 }
 0x11d   :  { %v169_v61 = vpop.permute.xlu1 %168  ;;  %v823_v62 = vpop.permute.xlu0 %272 }
 0x121   :  { %v143_v63 = vpop.permute.xlu1 %142  ;;  %v825_v0 = vpop.permute.xlu0 %198 }
 0x125   :  { %v121_v1 = vpop.permute.xlu1 %120  ;;  %v827_v2 = vpop.permute.xlu0 %224 }
 0x129   :  { %v829_v3 = vpop.permute.xlu1 %294  ;;  %v831_v4 = vpop.permute.xlu0 %150 }
 0x12d   :  { %v833_v5 = vpop.permute.xlu1 %246  ;;  %v835_v6 = vpop.permute.xlu0 %176 }
 0x131   :  { %v837_v7 = vpop.permute.xlu1 %220  ;;  %v241_v8 = vpop.permute.xlu0 %240 }
 0x132   :  { %v252_v20 = vsel %vm250_vm3, %v241_v8, %v815_v53  ;;  %v251_v22 = vsel %vm250_vm3, %v239_v55, %v241_v8 }
 0x135   :  { %v839_v9 = vpop.permute.xlu1 %172  ;;  %v263_v10 = vpop.permute.xlu0 %262 }
 0x136   :  { %v275_v17 = vsel %vm274_vm1, %v263_v10, %v265_v52 }
 0x137   :  { %v323_v24 = vsel %vm304_vm2, %v251_v22, %v275_v17 }
 0x139   :  { %v841_v11 = vpop.permute.xlu1 %124  ;;  %v843_v12 = vpop.permute.xlu0 %218 }
 0x13a   :  { %v228_v27 = vsel %vm226_vm4, %v217_v57, %v843_v12 }
 0x13d   :  { %v215_v13 = vpop.permute.xlu0 %214  ;;  %v289_v14 = vpop.permute.xlu1 %288 }
 0x13e   :  { %v300_v15 = vsel %vm298_vm0, %v289_v14, %v813_v51  ;;  %v299_v16 = vsel %vm298_vm0, %v287_v54, %v289_v14  ;;  %v227_v28 = vsel %vm226_vm4, %v215_v13, %v217_v57 }
 0x13f   :  { %581 = vmatprep.subr.msk.mxu0 %vm304_vm2, %v300_v15 }
 0x140   :  { %582 = vmatpush1.msk.msra.mxu0 %vm304_vm2, %v299_v16 }
 0x141   :  { %v851_v18 = vpop.permute.xlu0 %170  ;;  %v267_v19 = vpop.permute.xlu1 %266 }
 0x142   :  { %v276_v21 = vsel %vm274_vm1, %v265_v52, %v267_v19  ;;  %v180_v35 = vsel %vm178_vm6, %v169_v61, %v851_v18 }
 0x143   :  { %v324_v23 = vsel %vm304_vm2, %v252_v20, %v276_v21 }
 0x144   :  { %370 = vmatprep.subr.mxu0 %v324_v23 }
 0x145   :  { %v167_v25 = vpop.permute.xlu0 %166  ;;  %371 = vmatpush1.msra.mxu0 %v323_v24  ;;  %v193_v26 = vpop.permute.xlu1 %192 }
 0x146   :  { %v203_v29 = vsel %vm202_vm5, %v191_v59, %v193_v26  ;;  %v204_v30 = vsel %vm202_vm5, %v193_v26, %v817_v56  ;;  %v179_v38 = vsel %vm178_vm6, %v167_v25, %v169_v61  ;;  %v889_v59 = vld [vmem:[%s979_s3] sm:$0xff]  ;;  %s660_s3 = smov [#allocation5]  }
 0x147   :  { %v318_v31 = vsel %vm304_vm2, %v204_v30, %v228_v27  ;;  %v317_v34 = vsel %vm304_vm2, %v203_v29, %v227_v28  ;;  %v181_v27 = vsel %vm178_vm6, %v851_v18, %v839_v9  ;;  %s572_s10 = sshll.u32 %s660_s3, 4  ;;  %s573_s10 = int_to_ptr.vmem [resolvable:$true] %s572_s10 }
 0x148   :  { %372 = vmatprep.subr.mxu0 %v318_v31  ;;  %s624_s11 = scalar_lea.vmem %s573_s10, 768  ;;  %p629_p6 = scmp.lt.s32.totalorder %s573_s10, %s573_s10 }
 0x149   :  { %v869_v36 = vpop.permute.xlu0 %122  ;;  %373 = vmatpush1.msra.mxu0 %v317_v34  ;;  %v145_v37 = vpop.permute.xlu1 %144  ;;  %p625_p5 = scmp.ne.s32.totalorder %s573_s10, %s624_s11  ;;  %p630_p7 = scmp.lt.s32.totalorder %s624_s11, %s624_s11 }
 0x14a   :  { %v132_v39 = vsel %vm130_vm7, %v121_v1, %v869_v36  ;;  %v155_v40 = vsel %vm154_vm8, %v143_v63, %v145_v37  ;;  %v156_v41 = vsel %vm154_vm8, %v145_v37, %v819_v58  ;;  %v133_v34 = vsel %vm130_vm7, %v869_v36, %v841_v11 }
 0x14b   :  { %v312_v42 = vsel %vm304_vm2, %v156_v41, %v180_v35  ;;  %v311_v45 = vsel %vm304_vm2, %v155_v40, %v179_v38  ;;  %v306_v52 = vsel %vm304_vm2, %v751_v44, %v132_v39  ;;  %p631_p8 = por %p630_p7, %p629_p6 }
 0x14c   :  { %374 = vmatprep.subr.mxu0 %v312_v42 }
 0x14d   :  { %v293_v46 = vpop.permute.xlu0 %292  ;;  %375 = vmatpush1.msra.mxu0 %v311_v45  ;;  %v119_v49 = vpop.permute.xlu1 %118  ;;  %p632_p9 = pnand %p631_p8, %p625_p5 }
 0x14e   :  { %v131_v54 = vsel %vm130_vm7, %v119_v49, %v121_v1  ;;  %376 = vmatprep.subr.mxu0 %v306_v52  ;;  %v302_v55 = vsel %vm298_vm0, %v293_v46, %v829_v3  ;;  %v301_v57 = vsel %vm298_vm0, %v813_v51, %v293_v46  ;;  %v277_v51 = vsel %vm274_vm1, %v267_v19, %v821_v60 }
 0x14f   :  { %584 = vmatprep.subr.msk.mxu1 %vm304_vm2, %v302_v55  ;;  %v305_v44 = vsel %vm304_vm2, %v703_v32, %v131_v54 }
 0x150   :  { %377 = vmatpush1.msra.mxu0 %v305_v44  ;;  %585 = vmatpush1.msk.msra.mxu1 %vm304_vm2, %v301_v57 }
 0x151   :  { %v245_v61 = vpop.permute.xlu0 %244  ;;  %v271_v63 = vpop.permute.xlu1 %270  ;;  %583 = vmatmul.mubr.msk.f32.vlgmr.msra.gmra.mxu0 %vm330_vm9, %v889_v59 }
 0x152   :  { %v253_v1 = vsel %vm250_vm3, %v815_v53, %v245_v61  ;;  %v254_v8 = vsel %vm250_vm3, %v245_v61, %v833_v5  ;;  %v278_v32 = vsel %vm274_vm1, %v821_v60, %v271_v63  ;;  %552 = vmatprep.mubr.f32.mxu0 %v659_v47  ;;  %v279_v16 = vsel %vm274_vm1, %v271_v63, %v823_v62 }
 0x153   :  { %v326_v10 = vsel %vm304_vm2, %v254_v8, %v278_v32  ;;  %v325_v13 = vsel %vm304_vm2, %v253_v1, %v277_v51 }
 0x154   :  { %441 = vmatprep.subr.mxu1 %v326_v10 }
 0x155   :  { %v297_v14 = vpop.permute.xlu0 %296  ;;  %442 = vmatpush1.msra.mxu1 %v325_v13  ;;  %v249_v15 = vpop.permute.xlu1 %248 }
 0x156   :  { %v303_v53 = vsel %vm298_vm0, %v829_v3, %v297_v14  ;;  %v255_v17 = vsel %vm250_vm3, %v833_v5, %v249_v15  ;;  %587 = vmatprep.subr.msk.mxu0 %vm304_vm2, %v297_v14  ;;  %v328_v47 = vsel %vm304_vm2, %v249_v15, %v823_v62  ;;  %v229_v3 = vsel %vm226_vm4, %v843_v12, %v837_v7 }
 0x157   :  { %588 = vmatpush1.msk.msra.mxu0 %vm304_vm2, %v303_v53  ;;  %v327_v60 = vsel %vm304_vm2, %v255_v17, %v279_v16 }
 0x158   :  { %512 = vmatprep.subr.mxu0 %v328_v47 }
 0x159   :  { %v223_v19 = vpop.permute.xlu0 %222  ;;  %513 = vmatpush1.msra.mxu0 %v327_v60  ;;  %v197_v20 = vpop.permute.xlu1 %196 }
 0x15a   :  { %v230_v5 = vsel %vm226_vm4, %v837_v7, %v223_v19  ;;  %v205_v21 = vsel %vm202_vm5, %v817_v56, %v197_v20  ;;  %v206_v62 = vsel %vm202_vm5, %v197_v20, %v825_v0  ;;  %v231_v12 = vsel %vm226_vm4, %v223_v19, %v827_v2 }
 0x15b   :  { %v320_v22 = vsel %vm304_vm2, %v206_v62, %v230_v5  ;;  %v319_v23 = vsel %vm304_vm2, %v205_v21, %v229_v3 }
 0x15c   :  { %443 = vmatprep.subr.mxu1 %v320_v22 }
 0x15d   :  { %v175_v24 = vpop.permute.xlu0 %174  ;;  %444 = vmatpush1.msra.mxu1 %v319_v23  ;;  %v201_v25 = vpop.permute.xlu1 %200 }
 0x15e   :  { %v207_v7 = vsel %vm202_vm5, %v825_v0, %v201_v25  ;;  %v322_v56 = vsel %vm304_vm2, %v201_v25, %v827_v2  ;;  %v182_v30 = vsel %vm178_vm6, %v839_v9, %v175_v24 }
 0x15f   :  { %514 = vmatprep.subr.mxu0 %v322_v56  ;;  %v321_v26 = vsel %vm304_vm2, %v207_v7, %v231_v12 }
 0x160   :  { %515 = vmatpush1.msra.mxu0 %v321_v26 }
 0x161   :  { %v127_v28 = vpop.permute.xlu0 %126  ;;  %v149_v29 = vpop.permute.xlu1 %148 }
 0x162   :  { %v134_v31 = vsel %vm130_vm7, %v841_v11, %v127_v28  ;;  %v157_v0 = vsel %vm154_vm8, %v819_v58, %v149_v29  ;;  %v158_v2 = vsel %vm154_vm8, %v149_v29, %v831_v4  ;;  %v183_v58 = vsel %vm178_vm6, %v175_v24, %v835_v6 }
 0x163   :  { %v314_v18 = vsel %vm304_vm2, %v158_v2, %v182_v30  ;;  %v313_v35 = vsel %vm304_vm2, %v157_v0, %v181_v27  ;;  %v308_v37 = vsel %vm304_vm2, %v782_v48, %v134_v31  ;;  %v307_v11 = vsel %vm304_vm2, %v705_v33, %v133_v34 }
 0x164   :  { %445 = vmatprep.subr.mxu1 %v314_v18 }
 0x165   :  { %446 = vmatpush1.msra.mxu1 %v313_v35  ;;  %v153_v9 = vpop.permute.xlu1 %152 }
 0x166   :  { %v159_v38 = vsel %vm154_vm8, %v831_v4, %v153_v9  ;;  %447 = vmatprep.subr.mxu1 %v308_v37  ;;  %v316_v36 = vsel %vm304_vm2, %v153_v9, %v835_v6 }
 0x167   :  { %448 = vmatpush1.msra.mxu1 %v307_v11  ;;  %516 = vmatprep.subr.mxu0 %v316_v36  ;;  %v315_v39 = vsel %vm304_vm2, %v159_v38, %v183_v58 }
 0x168   :  { %517 = vmatpush1.msra.mxu0 %v315_v39  ;;  %586 = vmatmul.mubr.msk.f32.vlgmr.msra.gmra.mxu1 %vm330_vm9, %v889_v59 }
 0x169   :  { %v129_v48 = vpop.permute.xlu1 %128 }
 0x16a   :  { %v135_v40 = vsel %vm130_vm7, %v127_v28, %v129_v48  ;;  %v310_v4 = vsel %vm304_vm2, %v794_v50, %v129_v48 }
 0x16b   :  { %518 = vmatprep.subr.mxu0 %v310_v4  ;;  %v309_v33 = vsel %vm304_vm2, %v727_v43, %v135_v40 }
 0x16c   :  { %519 = vmatpush1.msra.mxu0 %v309_v33 }
 0x16d   :  { %589 = vmatmul.mubr.msk.f32.vlgmr.msra.gmra.mxu0 %vm330_vm9, %v889_v59 }
 0x211   :  { %v412_v6 = vpop.f32.mrf.mxu0 }
 0x212   :  { %559 = vst [vmem:[#allocation5] sm:$0xff] %v412_v6 }
 0x213   :  { %v414_v41 = vpop.f32.mrf.mxu0 }
 0x214   :  { %560 = vst [vmem:[#allocation5 + $0x8] sm:$0xff] %v414_v41 }
 0x228   :  { %v483_v42 = vpop.f32.mrf.mxu1 }
 0x229   :  { %561 = vst [vmem:[#allocation5 + $0x10] sm:$0xff] %v483_v42 }
 0x22a   :  { %v485_v45 = vpop.f32.mrf.mxu1 }
 0x22b   :  { %562 = vst [vmem:[#allocation5 + $0x18] sm:$0xff] %v485_v45 }
 0x22d   :  { %v554_v46 = vpop.f32.mrf.mxu0 }
 0x22e   :  { %563 = vst [vmem:[#allocation5 + $0x20] sm:$0xff] %v554_v46 }
 0x22f   :  { %v556_v50 = vpop.f32.mrf.mxu0 }
 0x230   :  { %565 = vst.msk [vmem:[#allocation5 + $0x28] sm:$0xff] %vm564_vm10, %v556_v50 }
 0x231   :  { %635 = shalt.err (!%p632_p9)
}
 0x232   :  { %575 = dma.vmem_to_hbm [thread:$0]  %s573_s10, 768, %s981_s5, [#allocation4]  }
 0x233   :  { %646 = dma.done.wait [#allocation4], 768  }
 0x234   :  { %647 = vsyncadd [#allocation4], 4294966528 }
 0x235   :  { %579 = vsyncpa [#allocation3], 1 }
 0x236   :  { %580 = vsyncpa [#allocation4], 1 }

</bundles_post_ra>
